<compile_context>
chip_gen: v7x
topology: tpu7x:2x2x1
jax: 0.10.0
libtpu: 0.0.40
codegen_flags: <defaults>
</compile_context>

<pallas_src>
import functools
import math

import jax
import jax.numpy as jnp
from jax.experimental import pallas as pl
from jax.experimental.pallas import tpu as pltpu

_SUB = 8                        # sublanes per vreg
_LANE = 128                     # lanes per vreg (minimum lane-dense width)
_MAX_BLOCK_BYTES = 2 * 1024 * 1024   # per input, per pipeline buffer
_NUM_CORE_SPLITS = 2            # leading "parallel" grid axis


def _round_up(x, m):
    return (x + m - 1) // m * m


def _focal_loss_kernel(x_ref, t_ref, o_ref, *, alpha, gamma, n_full_rows, rem,
                       block_rows, cols, may_need_mask, binary_targets):
    c = pl.program_id(0)            # core-split axis ("parallel")
    i = pl.program_id(1)            # sequential reduction axis ("arbitrary")
    steps = pl.num_programs(1)

    @pl.when(i == 0)
    def _():
        o_ref[...] = jnp.zeros_like(o_ref)

    x = x_ref[...].astype(jnp.float32)
    t = t_ref[...].astype(jnp.float32)

    # Numerically stable BCE-with-logits (torch semantics):
    #   bce = max(x, 0) - x*t + log1p(exp(-|x|))
    e = jnp.exp(-jnp.abs(x))
    bce = jnp.maximum(x, 0.0) - x * t + jnp.log1p(e)

    if binary_targets:
        # pt for hard {0,1} labels without a second exp:
        #   p = sigmoid(x); pt = p if t == 1 else 1 - p
        # With e = exp(-|x|): pt = 1/(1+e) when the label agrees with the sign
        # of the logit, else e/(1+e).  Exact for t in {0,1}.
        # (approx=True would shave a little more EUP on v7x at ~1e-4 rel err.)
        match = (x >= 0.0) == (t >= 0.5)
        numer = jnp.where(match, 1.0, e)
        pt = numer * pl.reciprocal(1.0 + e)
    else:
        pt = jnp.exp(-bce)

    one_m_pt = 1.0 - pt

    g = float(gamma)
    a = float(alpha)
    if g.is_integer() and g >= 0.0:
        gi = int(g)
        if gi == 0:
            f_loss = bce
        else:
            mod = one_m_pt
            for _ in range(gi - 1):        # gamma-1 multiplies (square for 2)
                mod = mod * one_m_pt
            f_loss = mod * bce
    else:
        f_loss = (one_m_pt ** jnp.float32(g)) * bce
    if a != 1.0:
        f_loss = jnp.float32(a) * f_loss

    def _accumulate(vals):
        # Splitting the leading dim is a layout-free reshape, so this stays a
        # pure VPU add into the resident (8, cols) output block.
        partial = vals.reshape(block_rows // _SUB, _SUB, cols).sum(axis=0)
        o_ref[...] = o_ref[...] + partial

    if may_need_mask:
        base_row = (c * steps + i) * block_rows

        @pl.when(base_row + block_rows <= n_full_rows)
        def _():
            _accumulate(f_loss)

        @pl.when(base_row + block_rows > n_full_rows)
        def _():
            row = base_row + jax.lax.broadcasted_iota(
                jnp.int32, (block_rows, cols), 0)
            valid = row < n_full_rows
            if rem:
                col = jax.lax.broadcasted_iota(
                    jnp.int32, (block_rows, cols), 1)
                valid = valid | ((row == n_full_rows) & (col < rem))
            _accumulate(jnp.where(valid, f_loss, 0.0))
    else:
        _accumulate(f_loss)


def focal_loss(inputs, targets, alpha=1.0, gamma=2.0, binary_targets=True):
    """Focal loss with mean reduction (logits=False, reduce=True).

    `binary_targets=True` assumes targets are hard {0, 1} labels (saves one
    transcendental per element); pass False for soft targets.
    Inputs/targets may be any float dtype; the kernel upcasts to f32.
    """
    assert inputs.shape == targets.shape
    n = math.prod(inputs.shape)

    # Largest lane-dense width that divides n (zero-copy reshape); otherwise
    # fall back to 1024 with a minimal tail pad.
    cols = next((c for c in (1024, 512, 256, 128) if n % c == 0), 1024)

    # At least _SUB rows so the (block_rows, cols) block never exceeds the
    # array in the sublane dim.  Pad only when unavoidable.
    n_target = max(_round_up(n, cols), _SUB * cols)
    pad = n_target - n
    rows = n_target // cols

    itemsize = max(inputs.dtype.itemsize, targets.dtype.itemsize)
    max_block_rows = max(
        _SUB, (_MAX_BLOCK_BYTES // itemsize // cols) // _SUB * _SUB)
    block_rows = max(
        _SUB,
        min(max_block_rows,
            _round_up(pl.cdiv(rows, _NUM_CORE_SPLITS), _SUB)),
    )

    num_blocks = pl.cdiv(rows, block_rows)
    # Only split across the leading axis when it divides evenly, so no grid
    # block is ever fully out of bounds of the (rows, cols) array.
    num_splits = _NUM_CORE_SPLITS if num_blocks % _NUM_CORE_SPLITS == 0 else 1
    steps = num_blocks // num_splits

    n_full_rows = n // cols
    rem = n % cols
    may_need_mask = num_blocks * block_rows > n_full_rows

    x_flat = inputs.reshape(-1)
    t_flat = targets.reshape(-1)
    if pad:
        # Only for n % 128 != 0 or tiny inputs; common NCHW sizes take the
        # zero-copy reshape path above.
        x_flat = jnp.pad(x_flat, (0, pad))
        t_flat = jnp.pad(t_flat, (0, pad))
    x2d = x_flat.reshape(rows, cols)
    t2d = t_flat.reshape(rows, cols)

    kernel = functools.partial(
        _focal_loss_kernel,
        alpha=float(alpha), gamma=float(gamma),
        n_full_rows=n_full_rows, rem=rem,
        block_rows=block_rows, cols=cols,
        may_need_mask=may_need_mask,
        binary_targets=bool(binary_targets),
    )

    in_map = lambda c, i: (c * steps + i, 0)

    partials = pl.pallas_call(
        kernel,
        out_shape=jax.ShapeDtypeStruct((num_splits * _SUB, cols), jnp.float32),
        grid_spec=pltpu.PrefetchScalarGridSpec(
            num_scalar_prefetch=0,
            grid=(num_splits, steps),
            in_specs=[
                pl.BlockSpec((block_rows, cols), in_map),
                pl.BlockSpec((block_rows, cols), in_map),
            ],
            # Output block index ignores i -> resident accumulator across the
            # reduction axis; written back when c changes / at the end.
            out_specs=pl.BlockSpec((_SUB, cols), lambda c, i: (c, 0)),
        ),
        compiler_params=pltpu.CompilerParams(
            # TODO(synk): on v7x verify in the profile that "parallel" shards
            # the 2-way leading axis across both TensorCores (else switch to
            # pltpu.CORE_PARALLEL there).
            dimension_semantics=("parallel", "arbitrary"),
            vmem_limit_bytes=32 * 1024 * 1024,
        ),
    )(x2d, t2d)

    # Single tiny cross-lane reduce + divide outside the kernel.
    return jnp.sum(partials) / jnp.float32(n)


def _focal_loss_ref(inputs, targets, alpha=1.0, gamma=2.0):
    x = inputs.astype(jnp.float32)
    t = targets.astype(jnp.float32)
    bce = jnp.maximum(x, 0.0) - x * t + jnp.log1p(jnp.exp(-jnp.abs(x)))
    pt = jnp.exp(-bce)
    return jnp.mean(alpha * (1.0 - pt) ** gamma * bce)


if __name__ == "__main__":
    key = jax.random.PRNGKey(0)
    k_x, k_t = jax.random.split(key)

    # Small NCHW-shaped example: batch=2, channels=4, spatial=16x16.
    x = jax.random.normal(k_x, (2, 4, 16, 16), dtype=jnp.float32)
    # Binary targets in {0, 1}, same shape as inputs (BCE-with-logits).
    t = jax.random.bernoulli(k_t, p=0.5, shape=(2, 4, 16, 16)).astype(jnp.float32)

    out = focal_loss(x, t, alpha=1.0, gamma=2.0)
    out = jax.block_until_ready(out)

    ref = _focal_loss_ref(x, t, alpha=1.0, gamma=2.0)
    assert jnp.allclose(out, ref, rtol=5e-5, atol=1e-6), (out, ref)

    print("KERNEL_OK")
</pallas_src>

<mosaic_0001>
module attributes {stable_mosaic.version = 11 : i64} {
  func.func @_focal_loss_kernel(%arg0: i32, %arg1: i32, %arg2: memref<8x1024xf32, #tpu.memory_space<vmem>>, %arg3: memref<8x1024xf32, #tpu.memory_space<vmem>>, %arg4: memref<8x1024xf32, #tpu.memory_space<vmem>>) attributes {dimension_semantics = [#tpu.dimension_semantics<parallel>, #tpu.dimension_semantics<arbitrary>], iteration_bounds = array<i64: 1, 1>, scalar_prefetch = 0 : i64, scratch_operands = 0 : i64, tpu.core_type = #tpu.core_type<tc>, window_params = [{transform_indices = @transform_0, window_bounds = array<i64: 8, 1024>}, {transform_indices = @transform_1, window_bounds = array<i64: 8, 1024>}, {transform_indices = @transform_2, window_bounds = array<i64: 8, 1024>}]} {
    %c0_i32 = arith.constant 0 : i32
    %0 = arith.cmpi eq, %arg1, %c0_i32 : i32
    %1 = arith.extui %0 : i1 to i32
    %c0_i32_0 = arith.constant 0 : i32
    %2 = arith.cmpi ne, %1, %c0_i32_0 : i32
    scf.if %2 {
      %cst_16 = arith.constant 0.000000e+00 : f32
      %42 = vector.broadcast %cst_16 : f32 to vector<8x1024xf32>
      %c0_17 = arith.constant 0 : index
      %c0_18 = arith.constant 0 : index
      %43 = vector.load %arg4[%c0_17, %c0_18] : memref<8x1024xf32, #tpu.memory_space<vmem>>, vector<8x1024xf32>
      tpu.vector_store %arg4[%c0_17, %c0_18], %42 {strides = array<i32>} : memref<8x1024xf32, #tpu.memory_space<vmem>>, vector<8x1024xf32>,
    } else {
    }
    %c0 = arith.constant 0 : index
    %c0_1 = arith.constant 0 : index
    %3 = vector.load %arg2[%c0, %c0_1] : memref<8x1024xf32, #tpu.memory_space<vmem>>, vector<8x1024xf32>
    %c0_2 = arith.constant 0 : index
    %c0_3 = arith.constant 0 : index
    %4 = vector.load %arg3[%c0_2, %c0_3] : memref<8x1024xf32, #tpu.memory_space<vmem>>, vector<8x1024xf32>
    %5 = math.absf %3 : vector<8x1024xf32>
    %cst = arith.constant 0.000000e+00 : f32
    %6 = vector.broadcast %cst : f32 to vector<8x1024xf32>
    %7 = arith.subf %6, %5 : vector<8x1024xf32>
    %8 = math.exp %7 : vector<8x1024xf32>
    %cst_4 = arith.constant 0.000000e+00 : f32
    %9 = vector.broadcast %cst_4 : f32 to vector<8x1024xf32>
    %10 = arith.maximumf %3, %9 : vector<8x1024xf32>
    %11 = arith.mulf %3, %4 : vector<8x1024xf32>
    %12 = arith.subf %10, %11 : vector<8x1024xf32>
    %13 = math.log1p %8 : vector<8x1024xf32>
    %14 = arith.addf %12, %13 : vector<8x1024xf32>
    %cst_5 = arith.constant 0.000000e+00 : f32
    %15 = vector.broadcast %cst_5 : f32 to vector<8x1024xf32>
    %16 = arith.cmpf oge, %3, %15 : vector<8x1024xf32>
    %cst_6 = arith.constant 5.000000e-01 : f32
    %17 = vector.broadcast %cst_6 : f32 to vector<8x1024xf32>
    %18 = arith.cmpf oge, %4, %17 : vector<8x1024xf32>
    %19 = arith.xori %16, %18 : vector<8x1024xi1>
    %cst_7 = arith.constant dense<true> : vector<8x1024xi1>
    %20 = arith.xori %19, %cst_7 : vector<8x1024xi1>
    %cst_8 = arith.constant 1.000000e+00 : f32
    %21 = vector.broadcast %cst_8 : f32 to vector<8x1024xf32>
    %22 = arith.select %20, %21, %8 : vector<8x1024xi1>, vector<8x1024xf32>
    %cst_9 = arith.constant 1.000000e+00 : f32
    %23 = vector.broadcast %cst_9 : f32 to vector<8x1024xf32>
    %24 = arith.addf %23, %8 : vector<8x1024xf32>
    %25 = tpu.reciprocal %24 : vector<8x1024xf32> -> vector<8x1024xf32>
    %26 = arith.mulf %22, %25 : vector<8x1024xf32>
    %cst_10 = arith.constant 1.000000e+00 : f32
    %27 = vector.broadcast %cst_10 : f32 to vector<8x1024xf32>
    %28 = arith.subf %27, %26 : vector<8x1024xf32>
    %29 = arith.mulf %28, %28 : vector<8x1024xf32>
    %30 = arith.mulf %29, %14 : vector<8x1024xf32>
    %c1_i32 = arith.constant 1 : i32
    %31 = arith.muli %arg0, %c1_i32 : i32
    %32 = arith.addi %31, %arg1 : i32
    %c8_i32 = arith.constant 8 : i32
    %33 = arith.muli %32, %c8_i32 : i32
    %c8_i32_11 = arith.constant 8 : i32
    %34 = arith.addi %33, %c8_i32_11 : i32
    %c2_i32 = arith.constant 2 : i32
    %35 = arith.cmpi sle, %34, %c2_i32 : i32
    %36 = arith.extui %35 : i1 to i32
    %c0_i32_12 = arith.constant 0 : i32
    %37 = arith.cmpi ne, %36, %c0_i32_12 : i32
    scf.if %37 {
      %42 = vector.shape_cast %30 : vector<8x1024xf32> to vector<1x8x1024xf32>
      %cst_16 = arith.constant dense<0.000000e+00> : vector<8x1024xf32>
      %43 = vector.multi_reduction <add>, %42, %cst_16 [0] : vector<1x8x1024xf32> to vector<8x1024xf32>
      %c0_17 = arith.constant 0 : index
      %c0_18 = arith.constant 0 : index
      %44 = vector.load %arg4[%c0_17, %c0_18] : memref<8x1024xf32, #tpu.memory_space<vmem>>, vector<8x1024xf32>
      %45 = arith.addf %44, %43 : vector<8x1024xf32>
      %c0_19 = arith.constant 0 : index
      %c0_20 = arith.constant 0 : index
      %46 = vector.load %arg4[%c0_19, %c0_20] : memref<8x1024xf32, #tpu.memory_space<vmem>>, vector<8x1024xf32>
      tpu.vector_store %arg4[%c0_19, %c0_20], %45 {strides = array<i32>} : memref<8x1024xf32, #tpu.memory_space<vmem>>, vector<8x1024xf32>,
    } else {
    }
    %c8_i32_13 = arith.constant 8 : i32
    %38 = arith.addi %33, %c8_i32_13 : i32
    %c2_i32_14 = arith.constant 2 : i32
    %39 = arith.cmpi sgt, %38, %c2_i32_14 : i32
    %40 = arith.extui %39 : i1 to i32
    %c0_i32_15 = arith.constant 0 : i32
    %41 = arith.cmpi ne, %40, %c0_i32_15 : i32
    scf.if %41 {
      %42 = tpu.iota {dimensions = array<i32: 0>} : vector<8x1024xi32>
      %43 = vector.broadcast %33 : i32 to vector<8x1024xi32>
      %44 = arith.addi %43, %42 : vector<8x1024xi32>
      %c2_i32_16 = arith.constant 2 : i32
      %45 = vector.broadcast %c2_i32_16 : i32 to vector<8x1024xi32>
      %46 = arith.cmpi slt, %44, %45 : vector<8x1024xi32>
      %cst_17 = arith.constant 0.000000e+00 : f32
      %47 = vector.broadcast %cst_17 : f32 to vector<8x1024xf32>
      %48 = arith.select %46, %30, %47 : vector<8x1024xi1>, vector<8x1024xf32>
      %49 = vector.shape_cast %48 : vector<8x1024xf32> to vector<1x8x1024xf32>
      %cst_18 = arith.constant dense<0.000000e+00> : vector<8x1024xf32>
      %50 = vector.multi_reduction <add>, %49, %cst_18 [0] : vector<1x8x1024xf32> to vector<8x1024xf32>
      %c0_19 = arith.constant 0 : index
      %c0_20 = arith.constant 0 : index
      %51 = vector.load %arg4[%c0_19, %c0_20] : memref<8x1024xf32, #tpu.memory_space<vmem>>, vector<8x1024xf32>
      %52 = arith.addf %51, %50 : vector<8x1024xf32>
      %c0_21 = arith.constant 0 : index
      %c0_22 = arith.constant 0 : index
      %53 = vector.load %arg4[%c0_21, %c0_22] : memref<8x1024xf32, #tpu.memory_space<vmem>>, vector<8x1024xf32>
      tpu.vector_store %arg4[%c0_21, %c0_22], %52 {strides = array<i32>} : memref<8x1024xf32, #tpu.memory_space<vmem>>, vector<8x1024xf32>,
    } else {
    }
    return
  }
  func.func @transform_0(%arg0: i32, %arg1: i32) -> (i32, i32) {
    %c1_i32 = arith.constant 1 : i32
    %0 = arith.muli %arg0, %c1_i32 : i32
    %1 = arith.addi %0, %arg1 : i32
    %c0_i32 = arith.constant 0 : i32
    %c0_i32_0 = arith.constant 0 : i32
    return %1, %c0_i32 : i32, i32
  }
  func.func @transform_1(%arg0: i32, %arg1: i32) -> (i32, i32) {
    %c1_i32 = arith.constant 1 : i32
    %0 = arith.muli %arg0, %c1_i32 : i32
    %1 = arith.addi %0, %arg1 : i32
    %c0_i32 = arith.constant 0 : i32
    %c0_i32_0 = arith.constant 0 : i32
    return %1, %c0_i32 : i32, i32
  }
  func.func @transform_2(%arg0: i32, %arg1: i32) -> (i32, i32) {
    %c0_i32 = arith.constant 0 : i32
    %c0_i32_0 = arith.constant 0 : i32
    return %arg0, %c0_i32 : i32, i32
  }
}

</mosaic_0001>

<bundles_post_ra>
// kernel: tpu_custom_call.1
= control target key start
LH: loop header
LB: loop body
LE: loop exit
PB: predicated region body
PF: predicated region fallthrough
CT: control target
= control target key end

     0   :  { %7 = vsyncpa [#allocation3], 0  ;;  %s851_s0 = inlined_call_operand.hbm [shape: f32[8,1024], index: 0, kind: input, shape index: {}]   ;;  %s852_s1 = inlined_call_operand.hbm [shape: f32[8,1024], index: 1, kind: input, shape index: {}]   ;;  %s853_s2 = inlined_call_operand.hbm [shape: f32[8,1024], index: 2, kind: output, shape index: {}]  }
   0x1   :  { %8 = vsyncpa [#allocation6], 0 }
   0x2   :  { %9 = vsyncpa [#allocation4], 0  ;;  %s527_s9 = smov [#allocation2]   ;;  %s528_s11 = smov [#allocation5]  }
   0x3   :  { %s20_s10 = sshll.u32 %s527_s9, 4  ;;  %s34_s12 = sshll.u32 %s528_s11, 4  ;;  %s21_s10 = int_to_ptr.vmem [resolvable:$true] %s20_s10  ;;  %s35_s12 = int_to_ptr.vmem [resolvable:$true] %s34_s12 }
   0x4   :  { %s455_s15 = scalar_lea.hbm %s851_s0, 1024 }
   0x5   :  { %p456_p0 = scmp.ne.s32.totalorder %s851_s0, %s455_s15  ;;  %p459_p1 = scmp.lt.u32.totalorder %s455_s15, %s851_s0 }
   0x7   :  { %p461_p2 = pnand %p459_p1, %p456_p0 }
   0x9   :  { %464 = shalt.err (!%p461_p2)
}
   0xa   :  { %s465_s20 = scalar_lea.vmem %s21_s10, 1024  ;;  %p470_p4 = scmp.lt.s32.totalorder %s21_s10, %s21_s10 }
   0xb   :  { %p466_p3 = scmp.ne.s32.totalorder %s21_s10, %s465_s20  ;;  %p471_p5 = scmp.lt.s32.totalorder %s465_s20, %s465_s20 }
   0xd   :  { %p472_p6 = por %p471_p5, %p470_p4 }
   0xf   :  { %p473_p7 = pnand %p472_p6, %p466_p3 }
  0x11   :  { %476 = shalt.err (!%p473_p7)
}
  0x12   :  { %23 = dma.hbm_to_vmem [thread:$0]  %s851_s0, 1024, %s21_s10, [#allocation3]  }
  0x13   :  { %s477_s25 = scalar_lea.hbm %s852_s1, 1024 }
  0x14   :  { %p478_p8 = scmp.ne.s32.totalorder %s852_s1, %s477_s25  ;;  %p481_p9 = scmp.lt.u32.totalorder %s477_s25, %s852_s1 }
  0x16   :  { %p483_p10 = pnand %p481_p9, %p478_p8 }
  0x18   :  { %486 = shalt.err (!%p483_p10)
}
  0x19   :  { %s487_s30 = scalar_lea.vmem %s35_s12, 1024  ;;  %p492_p12 = scmp.lt.s32.totalorder %s35_s12, %s35_s12 }
  0x1a   :  { %p488_p11 = scmp.ne.s32.totalorder %s35_s12, %s487_s30  ;;  %p493_p13 = scmp.lt.s32.totalorder %s487_s30, %s487_s30 }
  0x1c   :  { %p494_p0 = por %p493_p13, %p492_p12 }
  0x1e   :  { %p495_p1 = pnand %p494_p0, %p488_p11 }
  0x20   :  { %498 = shalt.err (!%p495_p1)
}
  0x21   :  { %37 = dma.hbm_to_vmem [thread:$0]  %s852_s1, 1024, %s35_s12, [#allocation6]  }
  0x22   :  { %521 = dma.done.wait [#allocation3], 1024  }
  0x23   :  { %522 = vsyncadd [#allocation3], 4294966272 }
  0x24   :  { %523 = dma.done.wait [#allocation6], 1024  }
  0x25   :  { %524 = vsyncadd [#allocation6], 4294966272  ;;  %v58_v0 = vld [vmem:[#allocation2] sm:$0xff]  ;;  %v570_v1 = vld [vmem:[#allocation2 + $0x8] sm:$0xff]  ;;  %v341_v11 = vlaneseq  ;;  %vm529_vm12 = vmmov 1   ;;  %s530_s1 = smov [#allocation7]  }
  0x26   :  { %v74_v2 = vand.u32 2147483647, %v58_v0  ;;  %v572_v3 = vld [vmem:[#allocation2 + $0x10] sm:$0xff]  ;;  %v75_v4 = vand.u32 2147483647, %v570_v1  ;;  %v575_v6 = vld [vmem:[#allocation2 + $0x18] sm:$0xff] }
  0x27   :  { %v76_v8 = vand.u32 2147483647, %v572_v3  ;;  %v66_v9 = vld [vmem:[#allocation5] sm:$0xff]  ;;  %v77_v14 = vand.u32 2147483647, %v575_v6  ;;  %v106_v16 = vmax.f32 %v58_v0, 0.0 }
  0x28   :  { %v82_v5 = vsub.f32 0.0, %v74_v2  ;;  %v83_v7 = vsub.f32 0.0, %v75_v4  ;;  %v579_v15 = vld [vmem:[#allocation2 + $0x20] sm:$0xff]  ;;  %v114_v17 = vmul.f32 %v66_v9, %v58_v0  ;;  %v581_v20 = vld [vmem:[#allocation2 + $0x28] sm:$0xff]  ;;  %vm210_vm0 = vcmp.ge.f32.partialorder %v58_v0, 0.0  ;;  %v68_v28 = vld [vmem:[#allocation5 + $0x10] sm:$0xff] }
  0x29   :  { %v84_v13 = vsub.f32 0.0, %v76_v8  ;;  %v85_v19 = vsub.f32 0.0, %v77_v14  ;;  %vm218_vm1 = vcmp.ge.f32.partialorder %v66_v9, 0.5  ;;  %v583_v21 = vshrl.u32 %v341_v11, 7  ;;  %v67_v22 = vld [vmem:[#allocation5 + $0x8] sm:$0xff]  ;;  %v592_v31 = vld [vmem:[#allocation2 + $0x30] sm:$0xff] }
  0x2a   :  { %v90_v10 = vmul.f32 1.442695, %v82_v5  ;;  %v92_v12 = vmul.f32 1.442695, %v83_v7  ;;  %v78_v23 = vand.u32 2147483647, %v579_v15  ;;  %v115_v25 = vmul.f32 %v67_v22, %v570_v1  ;;  %vm616_vm6 = vmxor %vm210_vm0, %vm218_vm1 }
  0x2b   :  { %v94_v18 = vmul.f32 1.442695, %v84_v13  ;;  %v107_v24 = vmax.f32 %v570_v1, 0.0  ;;  %v96_v26 = vmul.f32 1.442695, %v85_v19  ;;  %v588_v27 = vsub.f32 %v106_v16, %v114_v17  ;;  %v596_v34 = vld [vmem:[#allocation5 + $0x18] sm:$0xff]  ;;  %vm648_vm13 = vmxor %vm616_vm6, %vm529_vm12 }
  0x2c   :  { %407 = vpow2.f32 %v90_v10  ;;  %vm211_vm2 = vcmp.ge.f32.partialorder %v570_v1, 0.0  ;;  %v86_v29 = vsub.f32 0.0, %v78_v23  ;;  %v79_v30 = vand.u32 2147483647, %v581_v20  ;;  %v604_v40 = vld [vmem:[#allocation5 + $0x20] sm:$0xff]  ;;  %v607_v42 = vld [vmem:[#allocation2 + $0x38] sm:$0xff] }
  0x2d   :  { %409 = vpow2.f32 %v92_v12  ;;  %vm219_vm3 = vcmp.ge.f32.partialorder %v67_v22, 0.5  ;;  %v108_v32 = vmax.f32 %v572_v3, 0.0  ;;  %v116_v33 = vmul.f32 %v68_v28, %v572_v3  ;;  %v612_v45 = vld [vmem:[#allocation5 + $0x28] sm:$0xff]  ;;  %s392_s4 = sshll.u32 %s530_s1, 4  ;;  %s393_s4 = int_to_ptr.vmem [resolvable:$true] %s392_s4 }
  0x2e   :  { %411 = vpow2.f32 %v94_v18  ;;  %v109_v35 = vmax.f32 %v575_v6, 0.0  ;;  %v117_v36 = vmul.f32 %v596_v34, %v575_v6  ;;  %v98_v37 = vmul.f32 1.442695, %v86_v29  ;;  %vm638_vm9 = vmxor %vm211_vm2, %vm219_vm3  ;;  %s499_s5 = scalar_lea.vmem %s393_s4, 1024  ;;  %p504_p3 = scmp.lt.s32.totalorder %s393_s4, %s393_s4 }
  0x2f   :  { %413 = vpow2.f32 %v96_v26  ;;  %v87_v38 = vsub.f32 0.0, %v79_v30  ;;  %v601_v39 = vsub.f32 %v107_v24, %v115_v25  ;;  %vm212_vm4 = vcmp.ge.f32.partialorder %v572_v3, 0.0  ;;  %vm666_vm0 = vmxor %vm638_vm9, %vm529_vm12  ;;  %p500_p2 = scmp.ne.s32.totalorder %s393_s4, %s499_s5  ;;  %p505_p4 = scmp.lt.s32.totalorder %s499_s5, %s499_s5 }
  0x30   :  { %vm220_vm5 = vcmp.ge.f32.partialorder %v68_v28, 0.5  ;;  %v80_v41 = vand.u32 2147483647, %v592_v31  ;;  %415 = vpow2.f32 %v98_v37  ;;  %v110_v43 = vmax.f32 %v579_v15, 0.0 }
  0x31   :  { %v118_v44 = vmul.f32 %v604_v40, %v579_v15  ;;  %v100_v46 = vmul.f32 1.442695, %v87_v38  ;;  %v620_v48 = vsub.f32 %v108_v32, %v116_v33  ;;  %vm213_vm7 = vcmp.ge.f32.partialorder %v575_v6, 0.0  ;;  %vm228_vm1 = vmxor %vm212_vm4, %vm220_vm5  ;;  %p506_p5 = por %p505_p4, %p504_p3 }
  0x32   :  { %v111_v49 = vmax.f32 %v581_v20, 0.0  ;;  %v119_v50 = vmul.f32 %v612_v45, %v581_v20  ;;  %v628_v52 = vsub.f32 %v109_v35, %v117_v36  ;;  %vm221_vm8 = vcmp.ge.f32.partialorder %v596_v34, 0.5  ;;  %vm702_vm4 = vmxor %vm228_vm1, %vm529_vm12 }
  0x33   :  { %417 = vpow2.f32 %v100_v46  ;;  %v81_v53 = vand.u32 2147483647, %v607_v42  ;;  %vm214_vm10 = vcmp.ge.f32.partialorder %v579_v15, 0.0  ;;  %vm222_vm11 = vcmp.ge.f32.partialorder %v604_v40, 0.5  ;;  %vm690_vm2 = vmxor %vm213_vm7, %vm221_vm8  ;;  %p507_p6 = pnand %p506_p5, %p500_p2 }
  0x34   :  { %v88_v57 = vsub.f32 0.0, %v80_v41  ;;  %v653_v61 = vsub.f32 %v110_v43, %v118_v44  ;;  %vm215_vm14 = vcmp.ge.f32.partialorder %v581_v20, 0.0  ;;  %v659_v0 = vsub.f32 %v111_v49, %v119_v50  ;;  %vm712_vm5 = vmxor %vm214_vm10, %vm222_vm11 }
  0x35   :  { %vm223_vm15 = vcmp.ge.f32.partialorder %v612_v45, 0.5  ;;  %v89_v5 = vsub.f32 0.0, %v81_v53  ;;  %vm726_vm7 = vmxor %vm690_vm2, %vm529_vm12  ;;  %vm345_vm9 = vcmp.lt.s32.totalorder %v583_v21, 2  ;;  %vm216_vm1 = vcmp.ge.f32.partialorder %v592_v31, 0.0 }
  0x36   :  { %v626_v51 = vpop.eup %407  ;;  %v102_v10 = vmul.f32 1.442695, %v88_v57  ;;  %vm737_vm8 = vmxor %vm215_vm14, %vm223_vm15 }
  0x37   :  { %v632_v54 = vpop.eup %409  ;;  %v130_v55 = vadd.f32 1.0, %v626_v51  ;;  %v133_v58 = vmul.f32 -0.5, %v626_v51  ;;  %v136_v1 = vand.u32 2147483647, %v626_v51  ;;  %v242_v8 = vsel %vm648_vm13, 1.0, %v626_v51  ;;  %vm753_vm11 = vmxor %vm712_vm5, %vm529_vm12 }
  0x38   :  { %v139_v60 = vadd.f32 1.0, %v632_v54  ;;  %v656_v62 = vpop.eup %411  ;;  %v142_v63 = vmul.f32 -0.5, %v632_v54  ;;  %v145_v12 = vand.u32 2147483647, %v632_v54  ;;  %v243_v16 = vsel %vm666_vm0, 1.0, %v632_v54  ;;  %vm770_vm14 = vmxor %vm737_vm8, %vm529_vm12 }
  0x39   :  { %419 = vlog2.f32 %v130_v55  ;;  %v148_v4 = vadd.f32 1.0, %v656_v62  ;;  %v671_v7 = vpop.eup %413  ;;  %v151_v9 = vmul.f32 -0.5, %v656_v62  ;;  %v134_v11 = vadd.f32 1.0, %v133_v58 }
  0x3a   :  { %421 = vrcp.f32 %v130_v55  ;;  %v157_v13 = vadd.f32 1.0, %v671_v7  ;;  %v143_v14 = vadd.f32 1.0, %v142_v63  ;;  %v160_v17 = vmul.f32 -0.5, %v671_v7  ;;  %v694_v18 = vpop.eup %415 }
  0x3b   :  { %423 = vlog2.f32 %v139_v60  ;;  %vm696_vm3 = vcmp.lt.f32.partialorder %v136_v1, 0.0004427343  ;;  %v154_v22 = vand.u32 2147483647, %v656_v62  ;;  %v104_v24 = vmul.f32 1.442695, %v89_v5 }
  0x3c   :  { %425 = vrcp.f32 %v139_v60  ;;  %v152_v6 = vadd.f32 1.0, %v151_v9  ;;  %v163_v25 = vand.u32 2147483647, %v671_v7  ;;  %v166_v26 = vadd.f32 1.0, %v694_v18 }
  0x3d   :  { %427 = vlog2.f32 %v148_v4  ;;  %v716_v29 = vpop.eup %417  ;;  %v135_v30 = vmul.f32 %v626_v51, %v134_v11  ;;  %vm719_vm6 = vcmp.lt.f32.partialorder %v145_v12, 0.0004427343  ;;  %v161_v33 = vadd.f32 1.0, %v160_v17 }
  0x3e   :  { %429 = vrcp.f32 %v148_v4  ;;  %v144_v15 = vmul.f32 %v632_v54, %v143_v14  ;;  %v169_v35 = vmul.f32 -0.5, %v694_v18  ;;  %v175_v36 = vadd.f32 1.0, %v716_v29 }
  0x3f   :  { %431 = vlog2.f32 %v157_v13  ;;  %vm742_vm10 = vcmp.lt.f32.partialorder %v154_v22, 0.0004427343  ;;  %v244_v40 = vsel %vm702_vm4, 1.0, %v656_v62  ;;  %v172_v41 = vand.u32 2147483647, %v694_v18 }
  0x40   :  { %433 = vrcp.f32 %v157_v13  ;;  %v153_v44 = vmul.f32 %v656_v62, %v152_v6  ;;  %vm758_vm13 = vcmp.lt.f32.partialorder %v163_v25, 0.0004427343  ;;  %v245_v46 = vsel %vm726_vm7, 1.0, %v671_v7 }
  0x41   :  { %435 = vlog2.f32 %v166_v26  ;;  %v162_v50 = vmul.f32 %v671_v7, %v161_v33  ;;  %v178_v51 = vmul.f32 -0.5, %v716_v29  ;;  %v170_v56 = vadd.f32 1.0, %v169_v35 }
  0x42   :  { %437 = vrcp.f32 %v166_v26  ;;  %v246_v57 = vsel %vm753_vm11, 1.0, %v694_v18  ;;  %vm779_vm15 = vcmp.lt.f32.partialorder %v172_v41, 0.0004427343  ;;  %v181_v63 = vand.u32 2147483647, %v716_v29 }
  0x43   :  { %v420_v43 = vpop.eup %419  ;;  %439 = vlog2.f32 %v175_v36  ;;  %v247_v7 = vsel %vm770_vm14, 1.0, %v716_v29  ;;  %v179_v11 = vadd.f32 1.0, %v178_v51  ;;  %v171_v22 = vmul.f32 %v694_v18, %v170_v56 }
  0x44   :  { %v422_v47 = vpop.eup %421  ;;  %v132_v49 = vmul.f32 0.6931472, %v420_v43  ;;  %441 = vrcp.f32 %v175_v36  ;;  %vm794_vm0 = vcmp.lt.f32.partialorder %v181_v63, 0.0004427343  ;;  %v73_v63 = vld [vmem:[#allocation5 + $0x38] sm:$0xff]  ;;  %vm217_vm4 = vcmp.ge.f32.partialorder %v607_v42, 0.0 }
  0x45   :  { %v424_v54 = vpop.eup %423  ;;  %v266_v55 = vmul.f32 %v422_v47, %v242_v8  ;;  %443 = vpow2.f32 %v102_v10  ;;  %v180_v34 = vmul.f32 %v716_v29, %v179_v11  ;;  %vm225_vm5 = vcmp.ge.f32.partialorder %v73_v63, 0.5 }
  0x46   :  { %v426_v58 = vpop.eup %425  ;;  %v138_v59 = vsel %vm696_vm3, %v135_v30, %v132_v49  ;;  %v141_v60 = vmul.f32 0.6931472, %v424_v54  ;;  %445 = vpow2.f32 %v104_v24  ;;  %vm233_vm7 = vmxor %vm217_vm4, %vm225_vm5 }
  0x47   :  { %v428_v1 = vpop.eup %427  ;;  %v202_v2 = vadd.f32 %v138_v59, %v588_v27  ;;  %v274_v4 = vsub.f32 1.0, %v266_v55  ;;  %v267_v5 = vmul.f32 %v426_v58, %v243_v16 }
  0x48   :  { %v430_v8 = vpop.eup %429  ;;  %v147_v9 = vsel %vm719_vm6, %v144_v15, %v141_v60  ;;  %v150_v10 = vmul.f32 0.6931472, %v428_v1 }
  0x49   :  { %v432_v12 = vpop.eup %431  ;;  %v282_v13 = vmul.f32 %v274_v4, %v274_v4  ;;  %v203_v14 = vadd.f32 %v147_v9, %v601_v39  ;;  %v275_v17 = vsub.f32 1.0, %v267_v5  ;;  %v268_v3 = vmul.f32 %v430_v8, %v244_v40 }
  0x4a   :  { %v434_v27 = vpop.eup %433  ;;  %v156_v16 = vsel %vm742_vm10, %v153_v44, %v150_v10  ;;  %v159_v19 = vmul.f32 0.6931472, %v432_v12  ;;  %vm241_vm10 = vmxor %vm233_vm7, %vm529_vm12 }
  0x4b   :  { %v436_v6 = vpop.eup %435  ;;  %v290_v25 = vmul.f32 %v282_v13, %v202_v2  ;;  %v283_v24 = vmul.f32 %v275_v17, %v275_v17  ;;  %v204_v26 = vadd.f32 %v156_v16, %v620_v48  ;;  %v276_v28 = vsub.f32 1.0, %v268_v3 }
  0x4c   :  { %v438_v39 = vpop.eup %437  ;;  %v165_v30 = vsel %vm758_vm13, %v162_v50, %v159_v19  ;;  %v269_v32 = vmul.f32 %v434_v27, %v245_v46  ;;  %v168_v33 = vmul.f32 0.6931472, %v436_v6  ;;  %v72_v50 = vld [vmem:[#allocation5 + $0x30] sm:$0xff]  ;;  %v113_v16 = vmax.f32 %v607_v42, 0.0 }
  0x4d   :  { %v440_v15 = vpop.eup %439  ;;  %v346_v18 = vsel %vm345_vm9, %v290_v25, 0.0  ;;  %v291_v35 = vmul.f32 %v283_v24, %v203_v14  ;;  %v284_v36 = vmul.f32 %v276_v28, %v276_v28  ;;  %v205_v37 = vadd.f32 %v165_v30, %v628_v52 }
  0x4e   :  { %v442_v38 = vpop.eup %441  ;;  %v277_v40 = vsub.f32 1.0, %v269_v32  ;;  %v174_v48 = vsel %vm779_vm15, %v171_v22, %v168_v33  ;;  %v270_v41 = vmul.f32 %v438_v39, %v246_v57  ;;  %v177_v45 = vmul.f32 0.6931472, %v440_v15  ;;  %378 = vst [vmem:[#allocation7] sm:$0xff] %v346_v18 }
  0x4f   :  { %v444_v20 = vpop.eup %443  ;;  %v347_v43 = vsel %vm345_vm9, %v291_v35, 0.0  ;;  %v292_v44 = vmul.f32 %v284_v36, %v204_v26  ;;  %v206_v29 = vadd.f32 %v174_v48, %v653_v61  ;;  %v271_v49 = vmul.f32 %v442_v38, %v247_v7 }
  0x50   :  { %v285_v46 = vmul.f32 %v277_v40, %v277_v40  ;;  %v278_v47 = vsub.f32 1.0, %v270_v41  ;;  %v183_v51 = vsel %vm794_vm0, %v180_v34, %v177_v45  ;;  %v184_v53 = vadd.f32 1.0, %v444_v20  ;;  %v446_v54 = vpop.eup %445  ;;  %379 = vst [vmem:[#allocation7 + $0x8] sm:$0xff] %v347_v43 }
  0x51   :  { %v348_v52 = vsel %vm345_vm9, %v292_v44, 0.0  ;;  %v207_v61 = vadd.f32 %v183_v51, %v659_v0  ;;  %v279_v57 = vsub.f32 1.0, %v271_v49  ;;  %vm224_vm2 = vcmp.ge.f32.partialorder %v72_v50, 0.5 }
  0x52   :  { %v293_v55 = vmul.f32 %v285_v46, %v205_v37  ;;  %v286_v56 = vmul.f32 %v278_v47, %v278_v47  ;;  %447 = vlog2.f32 %v184_v53  ;;  %380 = vst [vmem:[#allocation7 + $0x10] sm:$0xff] %v348_v52  ;;  %v187_v60 = vmul.f32 -0.5, %v444_v20  ;;  %vm232_vm3 = vmxor %vm216_vm1, %vm224_vm2 }
  0x53   :  { %449 = vrcp.f32 %v184_v53  ;;  %v287_v62 = vmul.f32 %v279_v57, %v279_v57  ;;  %v193_v2 = vadd.f32 1.0, %v446_v54  ;;  %v112_v0 = vmax.f32 %v592_v31, 0.0  ;;  %vm826_vm6 = vmxor %vm232_vm3, %vm529_vm12 }
  0x54   :  { %v349_v58 = vsel %vm345_vm9, %v293_v55, 0.0  ;;  %v294_v59 = vmul.f32 %v286_v56, %v206_v29  ;;  %v120_v5 = vmul.f32 %v72_v50, %v592_v31  ;;  %v188_v7 = vadd.f32 1.0, %v187_v60 }
  0x55   :  { %381 = vst [vmem:[#allocation7 + $0x18] sm:$0xff] %v349_v58  ;;  %v295_v4 = vmul.f32 %v287_v62, %v207_v61  ;;  %451 = vlog2.f32 %v193_v2  ;;  %v190_v9 = vand.u32 2147483647, %v444_v20  ;;  %v196_v11 = vmul.f32 -0.5, %v446_v54 }
  0x56   :  { %v350_v1 = vsel %vm345_vm9, %v294_v59, 0.0  ;;  %453 = vrcp.f32 %v193_v2  ;;  %v189_v31 = vmul.f32 %v444_v20, %v188_v7  ;;  %v248_v12 = vsel %vm826_vm6, 1.0, %v444_v20 }
  0x57   :  { %382 = vst [vmem:[#allocation7 + $0x20] sm:$0xff] %v350_v1  ;;  %v351_v8 = vsel %vm345_vm9, %v295_v4, 0.0  ;;  %v128_v14 = vsub.f32 %v112_v0, %v120_v5  ;;  %vm191_vm8 = vcmp.lt.f32.partialorder %v190_v9, 0.0004427343  ;;  %v197_v17 = vadd.f32 1.0, %v196_v11 }
  0x58   :  { %383 = vst [vmem:[#allocation7 + $0x28] sm:$0xff] %v351_v8  ;;  %v121_v19 = vmul.f32 %v73_v63, %v607_v42  ;;  %v199_v22 = vand.u32 2147483647, %v446_v54  ;;  %v249_v28 = vsel %vm241_vm10, 1.0, %v446_v54 }
  0x59   :  { %v198_v26 = vmul.f32 %v446_v54, %v197_v17 }
  0x5a   :  { %v129_v30 = vsub.f32 %v113_v16, %v121_v19  ;;  %vm200_vm11 = vcmp.lt.f32.partialorder %v199_v22, 0.0004427343 }
  0x5c   :  { %v448_v13 = vpop.eup %447 }
  0x5d   :  { %v450_v3 = vpop.eup %449  ;;  %v186_v27 = vmul.f32 0.6931472, %v448_v13 }
  0x5e   :  { %v272_v23 = vmul.f32 %v450_v3, %v248_v12 }
  0x5f   :  { %v192_v6 = vsel %vm191_vm8, %v189_v31, %v186_v27  ;;  %v452_v39 = vpop.eup %451 }
  0x60   :  { %v208_v25 = vadd.f32 %v192_v6, %v128_v14  ;;  %v280_v24 = vsub.f32 1.0, %v272_v23  ;;  %v454_v32 = vpop.eup %453  ;;  %v195_v34 = vmul.f32 0.6931472, %v452_v39 }
  0x61   :  { %v273_v15 = vmul.f32 %v454_v32, %v249_v28 }
  0x62   :  { %v288_v33 = vmul.f32 %v280_v24, %v280_v24  ;;  %v201_v35 = vsel %vm200_vm11, %v198_v26, %v195_v34 }
  0x63   :  { %v209_v36 = vadd.f32 %v201_v35, %v129_v30  ;;  %v281_v42 = vsub.f32 1.0, %v273_v15 }
  0x64   :  { %v296_v18 = vmul.f32 %v288_v33, %v208_v25 }
  0x65   :  { %v289_v38 = vmul.f32 %v281_v42, %v281_v42 }
  0x66   :  { %v352_v37 = vsel %vm345_vm9, %v296_v18, 0.0 }
  0x67   :  { %384 = vst [vmem:[#allocation7 + $0x30] sm:$0xff] %v352_v37  ;;  %v297_v40 = vmul.f32 %v289_v38, %v209_v36 }
  0x69   :  { %v353_v48 = vsel %vm345_vm9, %v297_v40, 0.0 }
  0x6a   :  { %385 = vst [vmem:[#allocation7 + $0x38] sm:$0xff] %v353_v48 }
  0x6b   :  { %510 = shalt.err (!%p507_p6)
}
  0x6c   :  { %s511_s8 = scalar_lea.hbm %s853_s2, 1024 }
  0x6d   :  { %p512_p7 = scmp.ne.s32.totalorder %s853_s2, %s511_s8  ;;  %p515_p8 = scmp.lt.u32.totalorder %s511_s8, %s853_s2 }
  0x6f   :  { %p517_p9 = pnand %p515_p8, %p512_p7 }
  0x71   :  { %520 = shalt.err (!%p517_p9)
}
  0x72   :  { %395 = dma.vmem_to_hbm [thread:$0]  %s393_s4, 1024, %s853_s2, [#allocation4]  }
  0x73   :  { %525 = dma.done.wait [#allocation4], 1024  }
  0x74   :  { %526 = vsyncadd [#allocation4], 4294966272 }
  0x75   :  { %399 = vsyncpa [#allocation3], 1 }
  0x76   :  { %400 = vsyncpa [#allocation6], 1 }
  0x77   :  { %401 = vsyncpa [#allocation4], 1 }

</bundles_post_ra>
